<compile_context>
chip_gen: v7x
topology: tpu7x:2x2x1
jax: 0.10.0
libtpu: 0.0.40
codegen_flags: <defaults>
</compile_context>

<pallas_src>
import functools

import jax
import jax.numpy as jnp
from jax import lax
from jax.experimental import pallas as pl
from jax.experimental.pallas import tpu as pltpu

_LANE = 128          # lane width / output-tile granularity
_HALO = 128          # halo block width (covers kernel_size - 1 <= 128)


def _round_up(x, m):
    return ((x + m - 1) // m) * m


def _vmem_capacity_bytes():
    try:
        return int(pltpu.get_tpu_info().vmem_capacity_bytes)
    except Exception:
        # Off-device / unknown chip: assume the smallest (v7x-sized) physical VMEM
        # so the derived limits are always safe.
        return 64 * 1024 * 1024


def _pick_t_tile(c_in, k_mult, stride, in_it, out_it):
    """Largest lane tile whose double-buffered in/out blocks stay well inside VMEM."""
    budget = _vmem_capacity_bytes() // 4
    per_lane = c_in * (2 * stride * in_it + 2 * k_mult * out_it)
    t = budget // max(per_lane, 1)
    return int(max(_LANE, min(8192, (t // _LANE) * _LANE)))


def _pick_chunk(c_in, k_mult, stride):
    """Register-block sizes: channel groups + lane chunk so accumulators fit in vregs."""
    cg = c_in if c_in <= 32 else 32
    sub_groups = -(-min(c_in, cg) // 8)
    cw = 512
    while cw > _LANE and (k_mult + stride + 1) * sub_groups * (cw // _LANE) > 48:
        cw //= 2
    cgroups = tuple((i, min(cg, c_in - i)) for i in range(0, c_in, cg))
    return cw, cgroups


def _dwconv1d_kernel(*refs, taps, k_mult, ksize, t_tile, chunk_w, cgroups,
                     t_lim, t0_max, has_prev, has_bias, need_right_mask):
    """One (batch, time-tile) grid step.

    refs (in order): [prev (1,s,C,128)]?, main (1,s,C,t_tile), next (1,s,C,128),
                     w (C, K*ksize), [bias (C,K)]?, out (1,K,C,t_tile)
    taps: static tuple of (phase, shift) per kernel tap; shift may be negative
          (virtual left padding) only when has_prev.
    """
    i = 0
    prev_ref = None
    if has_prev:
        prev_ref = refs[i]; i += 1
    x_ref = refs[i]; i += 1
    nxt_ref = refs[i]; i += 1
    w_ref = refs[i]; i += 1
    b_ref = None
    if has_bias:
        b_ref = refs[i]; i += 1
    o_ref = refs[i]

    t0 = pl.program_id(1) * t_tile            # absolute column of local column 0

    w = w_ref[...].astype(jnp.float32)        # (C, K*ksize)
    bias = b_ref[...].astype(jnp.float32) if has_bias else None

    min_sh = min(sh for _, sh in taps)
    max_sh = max(sh for _, sh in taps)
    span = max_sh - min_sh
    phases = sorted({ph for ph, _ in taps})

    def load_window(ph, c0, cs, lo, width):
        # Columns [lo, lo+width) of the conceptual row [prev | main | next]
        # (prev = local cols [-_HALO, 0), next = [t_tile, t_tile+_HALO)).
        # Interior chunks are a single contiguous VMEM load -- no tile-wide copy;
        # only edge chunks concatenate a few halo columns.
        pieces = []
        a = lo
        end = lo + width
        if a < 0:
            stop = min(end, 0)
            pieces.append(prev_ref[0, ph, pl.ds(c0, cs), pl.ds(_HALO + a, stop - a)])
            a = stop
        if a < end and a < t_tile:
            stop = min(end, t_tile)
            pieces.append(x_ref[0, ph, pl.ds(c0, cs), pl.ds(a, stop - a)])
            a = stop
        if a < end:
            pieces.append(nxt_ref[0, ph, pl.ds(c0, cs), pl.ds(a - t_tile, end - a)])
        win = pieces[0] if len(pieces) == 1 else jnp.concatenate(pieces, axis=-1)
        win = win.astype(jnp.float32)
        # Zero the virtual conv padding; statically gated so most chunks skip it.
        need_l = has_prev and lo < 0
        need_r = need_right_mask and (t0_max + lo + width > t_lim)
        if need_l or need_r:
            cols = t0 + lo + lax.broadcasted_iota(jnp.int32, (cs, width), 1)
            ok = None
            if need_l:
                ok = cols >= 0
            if need_r:
                okr = cols < t_lim
                ok = okr if ok is None else jnp.logical_and(ok, okr)
            win = jnp.where(ok, win, 0.0)
        return win

    for c0, cs in cgroups:
        # Hoist per-(m, k) weight columns / bias out of the MAC loops.
        wcol = [[w[c0:c0 + cs, m * ksize + k:m * ksize + k + 1]
                 for k in range(ksize)] for m in range(k_mult)]
        bcol = ([bias[c0:c0 + cs, m:m + 1] for m in range(k_mult)]
                if has_bias else None)
        for lo in range(0, t_tile, chunk_w):
            cw = min(chunk_w, t_tile - lo)
            wins = {ph: load_window(ph, c0, cs, lo + min_sh, cw + span)
                    for ph in phases}
            accs = [None] * k_mult
            for k, (ph, sh) in enumerate(taps):
                off = sh - min_sh
                tap = wins[ph][:, off:off + cw]            # (cs, cw) f32
                for m in range(k_mult):
                    prod = tap * wcol[m][k]
                    accs[m] = prod if accs[m] is None else accs[m] + prod
            for m in range(k_mult):
                res = accs[m]
                if has_bias:
                    res = res + bcol[m]
                o_ref[0, m, pl.ds(c0, cs), pl.ds(lo, cw)] = res.astype(o_ref.dtype)


def depthwise_conv1d(x, weight, *, stride=1, padding=0, bias=None, t_tile=None):
    """Depthwise 1-D convolution (PyTorch Conv1d with groups == in_channels).

    x:      (B, C_in, T)
    weight: (C_out, 1, ksize) with C_out == K * C_in
    bias:   optional (C_out,)
    returns (B, C_out, T_out)
    """
    B, C_in, T = x.shape
    C_out, _, ksize = weight.shape
    assert C_out % C_in == 0, "out_channels must be a multiple of in_channels"
    K = C_out // C_in
    s = int(stride)
    p = int(padding)
    assert s >= 1 and ksize >= 1 and p >= 0
    assert ksize <= _HALO, "kernel_size > 128 not supported"
    T_out = (T + 2 * p - ksize) // s + 1
    assert T_out > 0

    in_it = jnp.dtype(x.dtype).itemsize
    out_it = in_it

    # ---- lane-dense time tiling (generation- and channel-aware) ---------------
    if t_tile is None:
        t_tile = _pick_t_tile(C_in, K, s, in_it, out_it)
    t_tile = int(t_tile)
    cw0, cgroups = _pick_chunk(C_in, K, s)
    # bound the unrolled (chunk x channel-group) count to keep compile time sane
    t_tile = min(t_tile, cw0 * max(1, 64 // len(cgroups)))
    t_tile = min(t_tile, _round_up(T_out, _LANE))
    if B == 1 and T_out > 2 * _LANE:
        # keep >= 2 time tiles so both v7x TensorCores get work when batch == 1
        t_tile = min(t_tile, _round_up(-(-T_out // 2), _LANE))
    t_tile = max(_LANE, (t_tile // _LANE) * _LANE)
    chunk_w = min(cw0, t_tile)
    nt = pl.cdiv(T_out, t_tile)
    r = t_tile // _LANE

    fused = (s == 1 and p <= _HALO)
    if fused:
        # No wrapper-side pad / copy: the kernel reads x directly and zero-masks the
        # virtual conv padding on the (few) edge chunks.
        x_v = x[:, None, :, :]                              # free size-1 reshape
        T_eff = T
        taps = tuple((0, k - p) for k in range(ksize))
        has_prev = p > 0
        need_right_mask = True
    else:
        # stride > 1 (or exotic padding): pre-pad & phase-decompose in the wrapper so
        # the kernel only does contiguous stride-1 slices.
        # TODO(synk): fold the stride phase split into the kernel via lane-strided tap
        # loads to save this extra HBM pass for stride > 1 as well.
        Tp = nt * t_tile + _HALO
        right = s * Tp - T - p
        assert right >= 0
        x_pad = jnp.pad(x, ((0, 0), (0, 0), (p, right)))
        if s == 1:
            x_v = x_pad[:, None, :, :]
        else:
            x_v = x_pad.reshape(B, C_in, Tp, s).transpose(0, 3, 1, 2)   # (B,s,C,Tp)
        T_eff = Tp
        taps = tuple((k % s, k // s) for k in range(ksize))
        has_prev = False
        need_right_mask = False

    has_bias = bias is not None
    w2 = weight.reshape(C_in, K * ksize)    # [c, m*ksize+k] == weight[c*K+m, 0, k]

    kernel = functools.partial(
        _dwconv1d_kernel, taps=taps, k_mult=K, ksize=ksize, t_tile=t_tile,
        chunk_w=chunk_w, cgroups=cgroups, t_lim=T_eff, t0_max=(nt - 1) * t_tile,
        has_prev=has_prev, has_bias=has_bias, need_right_mask=need_right_mask)

    n128 = pl.cdiv(T_eff, _LANE)
    nmain = pl.cdiv(T_eff, t_tile)

    in_specs = []
    args = []
    if has_prev:
        in_specs.append(pl.BlockSpec(
            (1, s, C_in, _HALO),
            lambda b, j, r=r, hi=n128 - 1:
                (b, 0, 0, jnp.minimum(jnp.maximum(j * r - 1, 0), hi))))
        args.append(x_v)
    in_specs.append(pl.BlockSpec(
        (1, s, C_in, t_tile),
        lambda b, j, hi=nmain - 1: (b, 0, 0, jnp.minimum(j, hi))))
    args.append(x_v)
    in_specs.append(pl.BlockSpec(
        (1, s, C_in, _HALO),
        lambda b, j, r=r, hi=n128 - 1: (b, 0, 0, jnp.minimum((j + 1) * r, hi))))
    args.append(x_v)
    in_specs.append(pl.BlockSpec((C_in, K * ksize), lambda b, j: (0, 0)))
    args.append(w2)
    if has_bias:
        in_specs.append(pl.BlockSpec((C_in, K), lambda b, j: (0, 0)))
        args.append(jnp.asarray(bias).reshape(C_in, K))

    out_spec = pl.BlockSpec((1, K, C_in, t_tile), lambda b, j: (b, 0, 0, j))

    # Generation-aware VMEM limit: actual block bytes (double-buffered) + headroom,
    # never more than half of physical VMEM (v7x has only 64 MiB per core).
    blk_bytes = (s * C_in * (t_tile + 2 * _HALO) * in_it
                 + K * C_in * t_tile * out_it)
    vmem_cap = _vmem_capacity_bytes()
    vmem_limit = int(min(vmem_cap // 2,
                         max(32 * 1024 * 1024, 2 * blk_bytes + 8 * 1024 * 1024)))

    out4 = pl.pallas_call(
        kernel,
        out_shape=jax.ShapeDtypeStruct((B, K, C_in, T_out), x.dtype),
        grid_spec=pltpu.PrefetchScalarGridSpec(
            num_scalar_prefetch=0,
            grid=(B, nt),
            in_specs=in_specs,
            out_specs=out_spec),
        compiler_params=pltpu.CompilerParams(
            dimension_semantics=("parallel", "parallel"),
            vmem_limit_bytes=vmem_limit),
    )(*args)

    if K == 1:
        # Drop the size-1 K axis: pure metadata reshape, no extra HBM pass.
        return out4.reshape(B, C_out, T_out)
    # TODO(synk): for K > 1, emit the interleaved (c_out = c*K + m) channel order
    # directly from the kernel to save this extra HBM pass over the output.
    return out4.transpose(0, 2, 1, 3).reshape(B, C_out, T_out)


if __name__ == "__main__":
    key = jax.random.PRNGKey(0)

    def _torch_like_weight(k, c_out, ksize):
        bound = 1.0 / (ksize ** 0.5)      # Conv1d kaiming-uniform, fan_in = ksize
        return jax.random.uniform(k, (c_out, 1, ksize), jnp.float32, -bound, bound)

    def _ref(x, w, stride, padding, bias):
        out = lax.conv_general_dilated(
            x, w, window_strides=(stride,), padding=[(padding, padding)],
            dimension_numbers=("NCH", "OIH", "NCH"),
            feature_group_count=x.shape[1])
        if bias is not None:
            out = out + bias[None, :, None]
        return out

    ks = jax.random.split(key, 10)

    # 1) in=4, out=8 (K=2), ksize=3, stride=1, pad=1, no bias (fused path, K>1).
    x1 = jax.random.normal(ks[0], (2, 4, 16), jnp.float32)
    w1 = _torch_like_weight(ks[1], 8, 3)
    o1 = jax.block_until_ready(depthwise_conv1d(x1, w1, stride=1, padding=1))
    r1 = _ref(x1, w1, 1, 1, None)
    assert o1.shape == r1.shape == (2, 8, 16)
    assert bool(jnp.allclose(o1, r1, atol=1e-5, rtol=1e-5))

    # 2) K=1 with fused bias, multiple time tiles (t_tile=128) -> halo + K==1 path.
    x2 = jax.random.normal(ks[2], (2, 8, 512), jnp.float32)
    w2 = _torch_like_weight(ks[3], 8, 5)
    b2 = jax.random.normal(ks[4], (8,), jnp.float32) * 0.1
    o2 = jax.block_until_ready(
        depthwise_conv1d(x2, w2, stride=1, padding=2, bias=b2, t_tile=128))
    r2 = _ref(x2, w2, 1, 2, b2)
    assert o2.shape == r2.shape
    assert bool(jnp.allclose(o2, r2, atol=1e-5, rtol=1e-5))

    # 3) stride=2 (phase-decomposed wrapper path, no lane-strided kernel slices).
    x3 = jax.random.normal(ks[5], (1, 4, 300), jnp.float32)
    w3 = _torch_like_weight(ks[6], 4, 3)
    o3 = jax.block_until_ready(
        depthwise_conv1d(x3, w3, stride=2, padding=1, t_tile=128))
    r3 = _ref(x3, w3, 2, 1, None)
    assert o3.shape == r3.shape
    assert bool(jnp.allclose(o3, r3, atol=1e-5, rtol=1e-5))

    # 4) ksize=7, pad=3, T not a multiple of 128 -> partial blocks + edge masking.
    x4 = jax.random.normal(ks[7], (2, 16, 200), jnp.float32)
    w4 = _torch_like_weight(ks[8], 16, 7)
    b4 = jax.random.normal(ks[9], (16,), jnp.float32) * 0.1
    o4 = jax.block_until_ready(
        depthwise_conv1d(x4, w4, stride=1, padding=3, bias=b4))
    r4 = _ref(x4, w4, 1, 3, b4)
    assert o4.shape == r4.shape == (2, 16, 200)
    assert bool(jnp.allclose(o4, r4, atol=1e-5, rtol=1e-5))

    print("KERNEL_OK")
</pallas_src>

<mosaic_0001>
module attributes {stable_mosaic.version = 11 : i64} {
  func.func @_dwconv1d_kernel(%arg0: i32, %arg1: i32, %arg2: memref<1x1x4x128xf32, #tpu.memory_space<vmem>>, %arg3: memref<1x1x4x128xf32, #tpu.memory_space<vmem>>, %arg4: memref<1x1x4x128xf32, #tpu.memory_space<vmem>>, %arg5: memref<4x6xf32, #tpu.memory_space<vmem>>, %arg6: memref<1x2x4x128xf32, #tpu.memory_space<vmem>>) attributes {dimension_semantics = [#tpu.dimension_semantics<parallel>, #tpu.dimension_semantics<parallel>], iteration_bounds = array<i64: 2, 1>, scalar_prefetch = 0 : i64, scratch_operands = 0 : i64, tpu.core_type = #tpu.core_type<tc>, window_params = [{transform_indices = @transform_0, window_bounds = array<i64: 1, 1, 4, 128>}, {transform_indices = @transform_1, window_bounds = array<i64: 1, 1, 4, 128>}, {transform_indices = @transform_2, window_bounds = array<i64: 1, 1, 4, 128>}, {pipeline_mode = #tpu.pipeline_mode<synchronous>, transform_indices = @transform_3, window_bounds = array<i64: 4, 6>}, {transform_indices = @transform_4, window_bounds = array<i64: 1, 2, 4, 128>}]} {
    %c128_i32 = arith.constant 128 : i32
    %0 = arith.muli %arg1, %c128_i32 : i32
    %c0 = arith.constant 0 : index
    %c0_0 = arith.constant 0 : index
    %1 = vector.load %arg5[%c0, %c0_0] : memref<4x6xf32, #tpu.memory_space<vmem>>, vector<4x6xf32>
    %2 = vector.extract_strided_slice %1 {offsets = [0, 0], sizes = [4, 1], strides = [1, 1]} : vector<4x6xf32> to vector<4x1xf32>
    %3 = vector.extract_strided_slice %1 {offsets = [0, 1], sizes = [4, 1], strides = [1, 1]} : vector<4x6xf32> to vector<4x1xf32>
    %4 = vector.extract_strided_slice %1 {offsets = [0, 2], sizes = [4, 1], strides = [1, 1]} : vector<4x6xf32> to vector<4x1xf32>
    %5 = vector.extract_strided_slice %1 {offsets = [0, 3], sizes = [4, 1], strides = [1, 1]} : vector<4x6xf32> to vector<4x1xf32>
    %6 = vector.extract_strided_slice %1 {offsets = [0, 4], sizes = [4, 1], strides = [1, 1]} : vector<4x6xf32> to vector<4x1xf32>
    %7 = vector.extract_strided_slice %1 {offsets = [0, 5], sizes = [4, 1], strides = [1, 1]} : vector<4x6xf32> to vector<4x1xf32>
    %c0_1 = arith.constant 0 : index
    %c0_2 = arith.constant 0 : index
    %c0_3 = arith.constant 0 : index
    %c127 = arith.constant 127 : index
    %8 = vector.load %arg2[%c0_1, %c0_2, %c0_3, %c127] : memref<1x1x4x128xf32, #tpu.memory_space<vmem>>, vector<1x1x4x1xf32>
    %9 = vector.shape_cast %8 : vector<1x1x4x1xf32> to vector<4x1xf32>
    %c0_4 = arith.constant 0 : index
    %c0_5 = arith.constant 0 : index
    %c0_6 = arith.constant 0 : index
    %c0_7 = arith.constant 0 : index
    %10 = vector.load %arg3[%c0_4, %c0_5, %c0_6, %c0_7] : memref<1x1x4x128xf32, #tpu.memory_space<vmem>>, vector<1x1x4x128xf32>
    %11 = vector.shape_cast %10 : vector<1x1x4x128xf32> to vector<4x128xf32>
    %c0_8 = arith.constant 0 : index
    %c0_9 = arith.constant 0 : index
    %c0_10 = arith.constant 0 : index
    %c0_11 = arith.constant 0 : index
    %12 = vector.load %arg4[%c0_8, %c0_9, %c0_10, %c0_11] : memref<1x1x4x128xf32, #tpu.memory_space<vmem>>, vector<1x1x4x1xf32>
    %13 = vector.shape_cast %12 : vector<1x1x4x1xf32> to vector<4x1xf32>
    %14 = tpu.concatenate %9, %11, %13 in 1 : vector<4x1xf32>, vector<4x128xf32>, vector<4x1xf32> -> vector<4x130xf32>
    %c-1_i32 = arith.constant -1 : i32
    %15 = arith.addi %0, %c-1_i32 : i32
    %16 = tpu.iota {dimensions = array<i32: 1>} : vector<4x130xi32>
    %17 = vector.broadcast %15 : i32 to vector<4x130xi32>
    %18 = arith.addi %17, %16 : vector<4x130xi32>
    %c0_i32 = arith.constant 0 : i32
    %19 = vector.broadcast %c0_i32 : i32 to vector<4x130xi32>
    %20 = arith.cmpi sge, %18, %19 : vector<4x130xi32>
    %c16_i32 = arith.constant 16 : i32
    %21 = vector.broadcast %c16_i32 : i32 to vector<4x130xi32>
    %22 = arith.cmpi slt, %18, %21 : vector<4x130xi32>
    %23 = arith.andi %20, %22 : vector<4x130xi1>
    %cst = arith.constant 0.000000e+00 : f32
    %24 = vector.broadcast %cst : f32 to vector<4x130xf32>
    %25 = arith.select %23, %14, %24 : vector<4x130xi1>, vector<4x130xf32>
    %26 = vector.extract_strided_slice %25 {offsets = [0, 0], sizes = [4, 128], strides = [1, 1]} : vector<4x130xf32> to vector<4x128xf32>
    %27 = vector.broadcast %2 : vector<4x1xf32> to vector<4x128xf32>
    %28 = arith.mulf %26, %27 : vector<4x128xf32>
    %29 = vector.broadcast %5 : vector<4x1xf32> to vector<4x128xf32>
    %30 = arith.mulf %26, %29 : vector<4x128xf32>
    %31 = vector.extract_strided_slice %25 {offsets = [0, 1], sizes = [4, 128], strides = [1, 1]} : vector<4x130xf32> to vector<4x128xf32>
    %32 = vector.broadcast %3 : vector<4x1xf32> to vector<4x128xf32>
    %33 = arith.mulf %31, %32 : vector<4x128xf32>
    %34 = arith.addf %28, %33 : vector<4x128xf32>
    %35 = vector.broadcast %6 : vector<4x1xf32> to vector<4x128xf32>
    %36 = arith.mulf %31, %35 : vector<4x128xf32>
    %37 = arith.addf %30, %36 : vector<4x128xf32>
    %38 = vector.extract_strided_slice %25 {offsets = [0, 2], sizes = [4, 128], strides = [1, 1]} : vector<4x130xf32> to vector<4x128xf32>
    %39 = vector.broadcast %4 : vector<4x1xf32> to vector<4x128xf32>
    %40 = arith.mulf %38, %39 : vector<4x128xf32>
    %41 = arith.addf %34, %40 : vector<4x128xf32>
    %42 = vector.broadcast %7 : vector<4x1xf32> to vector<4x128xf32>
    %43 = arith.mulf %38, %42 : vector<4x128xf32>
    %44 = arith.addf %37, %43 : vector<4x128xf32>
    %c0_12 = arith.constant 0 : index
    %c0_13 = arith.constant 0 : index
    %c0_14 = arith.constant 0 : index
    %c0_15 = arith.constant 0 : index
    %45 = vector.load %arg6[%c0_12, %c0_13, %c0_14, %c0_15] : memref<1x2x4x128xf32, #tpu.memory_space<vmem>>, vector<1x1x4x128xf32>
    %46 = vector.shape_cast %45 : vector<1x1x4x128xf32> to vector<4x128xf32>
    %47 = vector.shape_cast %41 : vector<4x128xf32> to vector<1x1x4x128xf32>
    tpu.vector_store %arg6[%c0_12, %c0_13, %c0_14, %c0_15], %47 {strides = array<i32>} : memref<1x2x4x128xf32, #tpu.memory_space<vmem>>, vector<1x1x4x128xf32>,
    %c0_16 = arith.constant 0 : index
    %c1 = arith.constant 1 : index
    %c0_17 = arith.constant 0 : index
    %c0_18 = arith.constant 0 : index
    %48 = vector.load %arg6[%c0_16, %c1, %c0_17, %c0_18] : memref<1x2x4x128xf32, #tpu.memory_space<vmem>>, vector<1x1x4x128xf32>
    %49 = vector.shape_cast %48 : vector<1x1x4x128xf32> to vector<4x128xf32>
    %50 = vector.shape_cast %44 : vector<4x128xf32> to vector<1x1x4x128xf32>
    tpu.vector_store %arg6[%c0_16, %c1, %c0_17, %c0_18], %50 {strides = array<i32>} : memref<1x2x4x128xf32, #tpu.memory_space<vmem>>, vector<1x1x4x128xf32>,
    return
  }
  func.func @transform_0(%arg0: i32, %arg1: i32) -> (i32, i32, i32, i32) {
    %c1_i32 = arith.constant 1 : i32
    %0 = arith.muli %arg1, %c1_i32 : i32
    %c1_i32_0 = arith.constant 1 : i32
    %1 = arith.subi %0, %c1_i32_0 : i32
    %c0_i32 = arith.constant 0 : i32
    %2 = arith.maxsi %1, %c0_i32 : i32
    %c0_i32_1 = arith.constant 0 : i32
    %3 = arith.minsi %2, %c0_i32_1 : i32
    %c0_i32_2 = arith.constant 0 : i32
    %c0_i32_3 = arith.constant 0 : i32
    %c0_i32_4 = arith.constant 0 : i32
    return %arg0, %c0_i32_2, %c0_i32_3, %3 : i32, i32, i32, i32
  }
  func.func @transform_1(%arg0: i32, %arg1: i32) -> (i32, i32, i32, i32) {
    %c0_i32 = arith.constant 0 : i32
    %0 = arith.minsi %arg1, %c0_i32 : i32
    %c0_i32_0 = arith.constant 0 : i32
    %c0_i32_1 = arith.constant 0 : i32
    %c0_i32_2 = arith.constant 0 : i32
    return %arg0, %c0_i32_0, %c0_i32_1, %0 : i32, i32, i32, i32
  }
  func.func @transform_2(%arg0: i32, %arg1: i32) -> (i32, i32, i32, i32) {
    %c1_i32 = arith.constant 1 : i32
    %0 = arith.addi %arg1, %c1_i32 : i32
    %c1_i32_0 = arith.constant 1 : i32
    %1 = arith.muli %0, %c1_i32_0 : i32
    %c0_i32 = arith.constant 0 : i32
    %2 = arith.minsi %1, %c0_i32 : i32
    %c0_i32_1 = arith.constant 0 : i32
    %c0_i32_2 = arith.constant 0 : i32
    %c0_i32_3 = arith.constant 0 : i32
    return %arg0, %c0_i32_1, %c0_i32_2, %2 : i32, i32, i32, i32
  }
  func.func @transform_3(%arg0: i32, %arg1: i32) -> (i32, i32) {
    %c0_i32 = arith.constant 0 : i32
    %c0_i32_0 = arith.constant 0 : i32
    %c0_i32_1 = arith.constant 0 : i32
    return %c0_i32, %c0_i32_0 : i32, i32
  }
  func.func @transform_4(%arg0: i32, %arg1: i32) -> (i32, i32, i32, i32) {
    %c0_i32 = arith.constant 0 : i32
    %c0_i32_0 = arith.constant 0 : i32
    %c0_i32_1 = arith.constant 0 : i32
    return %arg0, %c0_i32, %c0_i32_0, %arg1 : i32, i32, i32, i32
  }
}

</mosaic_0001>

<bundles_post_ra>
// kernel: tpu_custom_call.1
= control target key start
LH: loop header
LB: loop body
LE: loop exit
PB: predicated region body
PF: predicated region fallthrough
CT: control target
= control target key end

     0   :  { %s1196_s0 = inlined_call_operand.hbm [shape: f32[2,1,4,16], index: 0, kind: input, shape index: {}]   ;;  %s1197_s1 = inlined_call_operand.hbm [shape: f32[2,1,4,16], index: 1, kind: input, shape index: {}]   ;;  %s1198_s2 = inlined_call_operand.hbm [shape: f32[2,1,4,16], index: 2, kind: input, shape index: {}]   ;;  %s1199_s3 = inlined_call_operand.vmem [shape: f32[4,6], index: 3, kind: input, shape index: {}]   ;;  %s1200_s4 = inlined_call_operand.hbm [shape: f32[2,2,4,16], index: 4, kind: output, shape index: {}]  }
   0x1   :  { %1209 = sst [smem:[#allocation16_spill]] %s1197_s1 }
   0x2   :  { %9 = vsyncpa [#allocation3], 0 }
   0x3   :  { %11 = vsyncpa [#allocation3 + $0x1], 0 }
   0x4   :  { %12 = vsyncpa [#allocation6], 0 }
   0x5   :  { %14 = vsyncpa [#allocation6 + $0x1], 0 }
   0x6   :  { %15 = vsyncpa [#allocation4], 0 }
   0x7   :  { %17 = vsyncpa [#allocation4 + $0x1], 0  ;;  %s932_s15 = smov 0   ;;  %s934_s16 = smov 0  }
   0x8   :  { %s936_s17 = smov 0   ;;  %s938_s18 = smov 0  }
   0x9   :  { %s940_s19 = smov 0   ;;  %s942_s20 = smov 0  }
   0xa LB: > { %1210 = sst [smem:[#allocation12_spill]] %s886_s19  ;;  %s963_s21 = sadd.s32 4294967295, %s890_s20   ;;  %s890_s20 = sphi %s942_s20, %s23_s20   ;;  %s886_s19 = sphi %s940_s19, %s1234_s19   ;;  %s882_s18 = sphi %s938_s18, %s1233_s18   ;;  %s878_s17 = sphi %s936_s17, %s1237_s17   ;;  %s874_s16 = sphi %s934_s16, %s1236_s16   ;;  %s870_s15 = sphi %s932_s15, %s1235_s15  }
   0xb   : > { %1211 = sst [smem:[#allocation13_spill]] %s890_s20  ;;  %s603_s22 = sadd.s32 4294967294, %s890_s20  }
   0xc   : > { %s35_s23 = sadd.s32 1, %s886_s19  ;;  %s54_s24 = sadd.s32 1, %s878_s17 }
   0xd   : > { %p37_p0 = scmp.ge.s32.totalorder %s35_s23, 2  ;;  %p61_p1 = scmp.ne.s32.totalorder %s878_s17, %s874_s16 }
   0xe   : > { %p62_p2 = scmp.eq.s32.totalorder %s890_s20, 0  ;;  %p67_p3 = scmp.ne.s32.totalorder %s874_s16, %s870_s15 }
   0xf   : > { %s1239_s23 = smov (%p37_p0, %s35_s23), 0  ;;  %p68_p5 = scmp.eq.s32.totalorder %s963_s21, 0 }
  0x10   : > { %1212 = sst [smem:[#allocation14_spill]] %s1239_s23  ;;  %p975_p4 = por %p62_p2, %p61_p1 }
  0x11   : > { %s49_s26 = ssub.s32 %s886_s19, %s1239_s23  ;;  %p180_p6 = scmp.eq.s32.totalorder %s963_s21, 1 }
  0x12   : > { %p52_p7 = scmp.eq.s32.totalorder %s49_s26, 0  ;;  %p983_p8 = por %p68_p5, %p67_p3 }
  0x13   : > { %p987_p9 = por %p180_p6, %p61_p1  ;;  %p186_p10 = scmp.eq.s32.totalorder %s603_s22, 1 }
  0x14   : > { %s1214_s27 = scalar_select %p983_p8, 1, 0 }
  0x15   : > { %s1215_s28 = scalar_select %p987_p9, 1, 0 }
  0x16   : > { %s992_s29 = scalar_select %p52_p7, %s878_s17, %s54_s24  }
  0x17   : > { %p994_p11 = por %p186_p10, %p67_p3  ;;  %p646_p13 = scmp.lt.s32.totalorder %s890_s20, 2 }
  0x18   : > { %1216 = sst [smem:[#allocation15_spill]] %s992_s29  ;;  %s1201_s5 = sand.u32 1, %s878_s17  }
  0x19   : > { %s1217_s30 = scalar_select %p994_p11, 1, 0 }
  0x1a   : > { %s1003_s6 = sshll.u32 %s1201_s5, 2  ;;  %s1006_s7 = sshll.u32 %s886_s19, 6 }
  0x1b   : > { %p1010_p0 = pnand %p646_p13, %p975_p4  ;;  %s233_s9 = sand.u32 1, %s890_s20  }
  0x1c   : > { %s1219_s1 = sld [smem:[#allocation16_spill]]  ;;  %s237_s13 = scalar_lea.vmem [#allocation5], %s1003_s6 }
  0x1d   : > { %s1218_s8 = scalar_select %p1010_p0, 1, 0 }
  0x1e   : > { %s247_s14 = sshll.u32 %s237_s13, 4  ;;  %s1026_s22 = scalar_lea.sflag [#allocation6], %s233_s9  ;;  %s1023_s14 = int_to_ptr.vmem [resolvable:$true] %s247_s14 }
  0x1f   : > { %p1032_p4 = pneg %p1010_p0 }
  0x22   : > { %s1019_s12 = scalar_lea.hbm %s1219_s1, %s1006_s7  ;;  %s719_s11 = scalar_lea.hbm %s1219_s1, 128 }
  0x23   : > { %s714_s24 = scalar_lea.hbm %s1019_s12, 64  ;;  %p720_p7 = scmp.lt.u32.totalorder %s1019_s12, %s1219_s1 }
  0x24   : > { %p715_p3 = scmp.ne.s32.totalorder %s1019_s12, %s714_s24  ;;  %p721_p10 = scmp.lt.u32.totalorder %s719_s11, %s714_s24 }
  0x25   : > { %p723_p12 = scmp.lt.u32.totalorder %s714_s24, %s1019_s12 }
  0x26   : > { %p717_p5 = pnand %p1032_p4, %p715_p3  ;;  %p722_p13 = por %p721_p10, %p720_p7 }
  0x28   : > { %p718_p6 = pneg %p717_p5  ;;  %p724_p1 = por %p723_p12, %p722_p13 }
  0x2a   : > { %p725_p2 = pnand %p724_p1, %p718_p6 }
  0x2c   : > { %728 = shalt.err (!%p725_p2)
}
  0x2d   : > { %s729_s9 = scalar_lea.vmem %s1023_s14, 64  ;;  %s892_s26 = smov [#allocation5]  }
  0x2e   : > { %p730_p3 = scmp.ne.s32.totalorder %s1023_s14, %s729_s9  ;;  %s734_s10 = sshll.u32 %s892_s26, 4  ;;  %s735_s10 = int_to_ptr.vmem [resolvable:$false] %s734_s10 }
  0x2f   : > { %s736_s5 = scalar_lea.vmem %s735_s10, 128  ;;  %p737_p9 = scmp.lt.s32.totalorder %s1023_s14, %s735_s10 }
  0x30   : > { %p732_p5 = pnand %p730_p3, %p1032_p4  ;;  %p738_p8 = scmp.lt.s32.totalorder %s736_s5, %s729_s9 }
  0x32   : > { %p733_p11 = pneg %p732_p5  ;;  %p739_p7 = por %p738_p8, %p737_p9 }
  0x34   : > { %p740_p10 = pnand %p739_p7, %p733_p11 }
  0x36   : > { %743 = shalt.err (!%p740_p10)
}
  0x37   : > { %638 = dma.hbm_to_vmem [thread:$0]  (!%p1010_p0), %s1019_s12, 64, %s1023_s14, %s1026_s22  }
  0x38   : > { %p1221_p12 = scmp.lt.s32.totalorder %s890_s20, 3  ;;  %p1222_p1 = scmp.ge.s32.totalorder %s890_s20, 1 }
  0x39   : > { %s1068_s9 = scalar_lea.hbm %s1196_s0, %s1006_s7  ;;  %s213_s26 = scalar_lea.vmem [#allocation2], %s1003_s6 }
  0x3a   : > { %p1060_p2 = pnand %p1222_p1, %p1221_p12  ;;  %s226_s10 = sshll.u32 %s213_s26, 4  ;;  %s1071_s10 = int_to_ptr.vmem [resolvable:$true] %s226_s10 }
  0x3b   : > { %s1077_s5 = scalar_lea.hbm %s1198_s2, %s1006_s7  ;;  %s1224_s1 = sand.u32 1, %s878_s17  }
  0x3c   : > { %s1223_s24 = scalar_select %p1060_p2, 1, 0 }
  0x3d   : > { %s210_s23 = scalar_lea.sflag [#allocation3], %s1224_s1  ;;  %s744_s19 = scalar_lea.hbm %s1068_s9, 64 }
  0x3e   : > { %p745_p8 = scmp.ne.s32.totalorder %s1068_s9, %s744_s19  ;;  %s749_s29 = scalar_lea.hbm %s1196_s0, 128 }
  0x3f   : > { %p750_p6 = scmp.lt.u32.totalorder %s1068_s9, %s1196_s0  ;;  %p751_p13 = scmp.lt.u32.totalorder %s749_s29, %s744_s19 }
  0x40   : > { %p747_p9 = pnand %p745_p8, %p1032_p4  ;;  %p753_p5 = scmp.lt.u32.totalorder %s744_s19, %s1068_s9 }
  0x41   : > { %p752_p3 = por %p751_p13, %p750_p6 }
  0x42   : > { %p748_p11 = pneg %p747_p9 }
  0x43   : > { %p754_p7 = por %p753_p5, %p752_p3 }
  0x45   : > { %p755_p10 = pnand %p754_p7, %p748_p11 }
  0x47   : > { %758 = shalt.err (!%p755_p10)
}
  0x48   : > { %s759_s1 = scalar_lea.vmem %s1071_s10, 64  ;;  %s893_s7 = smov [#allocation2]  }
  0x49   : > { %p760_p12 = scmp.ne.s32.totalorder %s1071_s10, %s759_s1  ;;  %s764_s12 = sshll.u32 %s893_s7, 4  ;;  %s765_s12 = int_to_ptr.vmem [resolvable:$false] %s764_s12 }
  0x4a   : > { %s766_s20 = scalar_lea.vmem %s765_s12, 128  ;;  %p767_p9 = scmp.lt.s32.totalorder %s1071_s10, %s765_s12 }
  0x4b   : > { %p762_p1 = pnand %p760_p12, %p1032_p4  ;;  %p768_p2 = scmp.lt.s32.totalorder %s766_s20, %s759_s1 }
  0x4d   : > { %p763_p8 = pneg %p762_p1  ;;  %p769_p6 = por %p768_p2, %p767_p9 }
  0x4f   : > { %p770_p13 = pnand %p769_p6, %p763_p8 }
  0x51   : > { %773 = shalt.err (!%p770_p13)
}
  0x52   : > { %635 = dma.hbm_to_vmem [thread:$0]  (!%p1010_p0), %s1068_s9, 64, %s1071_s10, %s210_s23  }
  0x53   : > { %s258_s19 = scalar_lea.vmem [#allocation7], %s1003_s6  ;;  %s774_s14 = scalar_lea.hbm %s1077_s5, 64 }
  0x54   : > { %s269_s29 = sshll.u32 %s258_s19, 4  ;;  %p775_p11 = scmp.ne.s32.totalorder %s1077_s5, %s774_s14  ;;  %s270_s29 = int_to_ptr.vmem [resolvable:$true] %s269_s29 }
  0x55   : > { %s779_s26 = scalar_lea.hbm %s1198_s2, 128  ;;  %p780_p5 = scmp.lt.u32.totalorder %s1077_s5, %s1198_s2 }
  0x56   : > { %p777_p2 = pnand %p775_p11, %p1032_p4  ;;  %p781_p7 = scmp.lt.u32.totalorder %s779_s26, %s774_s14 }
  0x57   : > { %p783_p12 = scmp.lt.u32.totalorder %s774_s14, %s1077_s5 }
  0x58   : > { %p778_p3 = pneg %p777_p2  ;;  %p782_p10 = por %p781_p7, %p780_p5 }
  0x5a   : > { %p784_p1 = por %p783_p12, %p782_p10 }
  0x5c   : > { %p785_p8 = pnand %p784_p1, %p778_p3 }
  0x5e   : > { %788 = shalt.err (!%p785_p8)
}
  0x5f   : > { %s789_s23 = scalar_lea.vmem %s270_s29, 64  ;;  %s894_s6 = smov [#allocation7]  }
  0x60   : > { %p790_p9 = scmp.ne.s32.totalorder %s270_s29, %s789_s23  ;;  %s794_s9 = sshll.u32 %s894_s6, 4  ;;  %s795_s9 = int_to_ptr.vmem [resolvable:$false] %s794_s9 }
  0x61   : > { %s796_s10 = scalar_lea.vmem %s795_s9, 128  ;;  %p797_p11 = scmp.lt.s32.totalorder %s270_s29, %s795_s9 }
  0x62   : > { %p792_p6 = pnand %p790_p9, %p1032_p4  ;;  %p798_p2 = scmp.lt.s32.totalorder %s796_s10, %s789_s23 }
  0x64   : > { %p793_p13 = pneg %p792_p6  ;;  %p799_p0 = por %p798_p2, %p797_p11 }
  0x66   : > { %p800_p5 = pnand %p799_p0, %p793_p13 }
  0x68   : > { %803 = shalt.err (!%p800_p5)
}
  0x69   : > { %p1225_p7 = scmp.ne.s32.totalorder %s1218_s8, 0  ;;  %p1226_p3 = scmp.ne.s32.totalorder %s1223_s24, 0 }
  0x6a   : > { %s1124_s25 = sand.u32 (!%p1226_p3), 1, %s874_s16   ;;  %p1227_p4 = scmp.ne.s32.totalorder (!%p1226_p3), %s1214_s27, 0 }
  0x6b   : > { %641 = dma.hbm_to_vmem [thread:$0]  (!%p1225_p7), %s1077_s5, 64, %s270_s29, %s1026_s22  }
  0x6c   : > { %278 = sbr.rel (%p1226_p3) target bundleno = 411 (0x19b), region = 36  ;;  %s613_s12 = sshll.u32 (!%p1226_p3), %s1124_s25, 2 }
  0x6d   : > { %s281_s20 = scalar_lea.sflag (!%p1226_p3), [#allocation3], %s1124_s25  ;;  %s284_s19 = scalar_lea.vmem (!%p1226_p3), [#allocation2], %s613_s12 }
  0x73   : > { %857 = dma.done.wait (%p1227_p4), %s281_s20, 64  }
  0x74   : > { %859 = vsyncadd (%p1227_p4), %s281_s20, 4294967232  ;;  %s289_s8 = sand.u32 1, %s963_s21   ;;  %s293_s24 = scalar_lea.vmem [#allocation5], %s613_s12 }
  0x75   : > { %s290_s22 = scalar_lea.sflag [#allocation6], %s289_s8 }
  0x76   : > { %861 = dma.done.wait (%p1227_p4), %s290_s22, 128  }
  0x77   : > { %863 = vsyncadd (%p1227_p4), %s290_s22, 4294967168  ;;  %v895_v0 = vmov 2   ;;  %v896_v1 = vmov 1   ;;  %v348_v2 = vld [vmem:[%s1199_s3] sm:$0xf]  ;;  %v897_v3 = vmov 5   ;;  %v368_v9 = vlaneseq }
  0x78   : > { %709 = vset.pattern.permute.xlu1 %v895_v0  ;;  %707 = vset.pattern.permute.xlu0 %v896_v1  ;;  %v898_v4 = vmov 4   ;;  %v349_v5 = vld [vmem:[%s284_s19] sm:$0xf]  ;;  %v350_v6 = vld [vmem:[%s293_s24] sm:$0xf]  ;;  %s899_s21 = smov 1  }
  0x79   : > { %425 = vperm.xlu1 %709, %v348_v2   ;;  %394 = vperm.xlu0 %707, %v348_v2   ;;  %v900_v7 = vmov 0   ;;  %v901_v8 = vmov 3   ;;  %v369_v10 = vand.u32 127, %v368_v9  ;;  %vm364_vm2 = vcmask 7168   ;;  %s902_s27 = smov 127   ;;  %s903_s14 = smov 126  }
  0x7a   : > { %vm405_vm4 = vcmask 1039360   ;;  %s616_s11 = sshll.u32 %s1124_s25, 3  ;;  %vm436_vm5 = vcmask 1031168   ;;  %s623_s1 = sshll.u32 %s882_s18, 7 }
  0x7b   : > { %v372_v13 = vadd.s32 4294967295, %v369_v10  ;;  %s336_s13 = scalar_lea.vmem [#allocation8], %s616_s11  ;;  %s1147_s6 = scalar_lea.hbm %s1200_s4, %s623_s1 }
  0x7c   : > { %s473_s26 = sshll.u32 %s336_s13, 4  ;;  %s459_s9 = scalar_lea.sflag [#allocation4], %s1124_s25  ;;  %s1142_s26 = int_to_ptr.vmem [resolvable:$true] %s473_s26 }
  0x7d   : > { %710 = vset.pattern.permute.xlu1 %v897_v3  ;;  %708 = vset.pattern.permute.xlu0 %v898_v4  ;;  %vm374_vm0 = vcmp.ge.s32.totalorder %v372_v13, 0  ;;  %vm376_vm1 = vcmp.lt.s32.totalorder %v372_v13, 16  ;;  %s804_s10 = scalar_lea.vmem %s1142_s26, 128  ;;  %p1228_p10 = scmp.ne.s32.totalorder %s1215_s28, 0 }
  0x7e   : > { %441 = vperm.xlu1 %710, %v348_v2   ;;  %410 = vperm.xlu0 %708, %v348_v2   ;;  %vm378_vm3 = vmand %vm374_vm0, %vm376_vm1  ;;  %p805_p0 = scmp.ne.s32.totalorder %s1142_s26, %s804_s10  ;;  %s904_s18 = smov [#allocation8]  }
  0x7f   : > { %s808_s12 = sshll.u32 %s904_s18, 4  ;;  %s809_s12 = int_to_ptr.vmem [resolvable:$false] %s808_s12 }
  0x80   : > { %p806_p12 = pnand %p805_p0, %p1228_p10  ;;  %s810_s20 = scalar_lea.vmem %s809_s12, 256 }
  0x81   : > { %p811_p8 = scmp.lt.s32.totalorder %s1142_s26, %s809_s12  ;;  %p812_p9 = scmp.lt.s32.totalorder %s810_s20, %s804_s10 }
  0x82   : > { %353 = vrot.lane.b32.xlu1 %v349_v5, %s899_s21  ;;  %357 = vrot.lane.b32.xlu0 %v350_v6, %s899_s21  ;;  %p807_p1 = pneg %p806_p12 }
  0x83   : > { %711 = vset.pattern.permute.xlu1 %v900_v7  ;;  %712 = vset.pattern.permute.xlu0 %v901_v8  ;;  %p813_p6 = por %p812_p9, %p811_p8 }
  0x85   : > { %p814_p13 = pnand %p813_p6, %p807_p1 }
  0x86   : > { %384 = vperm.xlu1 %711, %v348_v2   ;;  %389 = vperm.xlu0 %712, %v348_v2  }
  0x8a   : > { %713 = vset.pattern.permute.xlu0 %v897_v3 }
  0xf8   : > { %v426_v11 = vpop.permute.xlu1 %425  ;;  %v395_v12 = vpop.permute.xlu0 %394 }
  0xf9   : > { %v398_v22 = vmul.f32 0.0, %v395_v12  ;;  %v429_v26 = vmul.f32 0.0, %v426_v11 }
  0xfd   : > { %v442_v14 = vpop.permute.xlu1 %441  ;;  %v411_v15 = vpop.permute.xlu0 %410 }
  0xfe   : > { %v414_v24 = vmul.f32 0.0, %v411_v15  ;;  %v445_v27 = vmul.f32 0.0, %v442_v14 }
 0x101   : > { %v354_v16 = vpop.permute.xlu1 %353  ;;  %v358_v17 = vpop.permute.xlu0 %357 }
 0x102   : > { %v365_v18 = vsel %vm364_vm2, %v354_v16, %v358_v17 }
 0x103   : > { %v380_v19 = vsel %vm378_vm3, %v365_v18, 0.0 }
 0x104   : > { %v413_v20 = vmul.f32 %v411_v15, %v380_v19  ;;  %v397_v21 = vmul.f32 %v395_v12, %v380_v19  ;;  %v428_v23 = vmul.f32 %v426_v11, %v380_v19  ;;  %v444_v25 = vmul.f32 %v442_v14, %v380_v19 }
 0x105   : > { %v385_v28 = vpop.permute.xlu1 %384  ;;  %v390_v29 = vpop.permute.xlu0 %389 }
 0x106   : > { %417 = vrot.lane.b32.xlu0 %v413_v20, %s902_s27  ;;  %401 = vrot.lane.b32.xlu1 %v397_v21, %s902_s27  ;;  %v387_v35 = vmul.f32 %v385_v28, %v380_v19  ;;  %v392_v41 = vmul.f32 %v390_v29, %v380_v19 }
 0x10a   : > { %432 = vrot.lane.b32.xlu0 %v428_v23, %s903_s14  ;;  %403 = vrot.lane.b32.xlu1 %v398_v22, %s902_s27 }
 0x10e   : > { %448 = vrot.lane.b32.xlu0 %v444_v25, %s903_s14  ;;  %419 = vrot.lane.b32.xlu1 %v414_v24, %s902_s27 }
 0x112   : > { %434 = vrot.lane.b32.xlu1 %v429_v26, %s903_s14 }
 0x116   : > { %450 = vrot.lane.b32.xlu1 %v445_v27, %s903_s14 }
 0x178   : > { %v402_v30 = vpop.permute.xlu1 %401  ;;  %v418_v31 = vpop.permute.xlu0 %417 }
 0x17c   : > { %v404_v32 = vpop.permute.xlu1 %403  ;;  %v433_v36 = vpop.permute.xlu0 %432 }
 0x17d   : > { %v406_v34 = vsel %vm405_vm4, %v402_v30, %v404_v32 }
 0x17e   : > { %v408_v37 = vadd.f32 %v406_v34, %v387_v35 }
 0x180   : > { %v420_v33 = vpop.permute.xlu1 %419  ;;  %v449_v44 = vpop.permute.xlu0 %448 }
 0x181   : > { %v421_v39 = vsel %vm405_vm4, %v418_v31, %v420_v33 }
 0x182   : > { %v423_v43 = vadd.f32 %v421_v39, %v392_v41 }
 0x184   : > { %v435_v38 = vpop.permute.xlu1 %434 }
 0x185   : > { %v437_v40 = vsel %vm436_vm5, %v433_v36, %v435_v38 }
 0x186   : > { %v439_v42 = vadd.f32 %v437_v40, %v408_v37 }
 0x188   : > { %455 = vst [vmem:[%s336_s13] sm:$0xf] %v439_v42  ;;  %v451_v45 = vpop.permute.xlu1 %450 }
 0x189   : > { %v452_v46 = vsel %vm436_vm5, %v449_v44, %v451_v45 }
 0x18a   : > { %v454_v47 = vadd.f32 %v452_v46, %v423_v43 }
 0x18c   : > { %617 = vst [vmem:[%s336_s13 + $0x4] sm:$0xf] %v454_v47 }
 0x18d   : > { %817 = shalt.err (!%p814_p13)
}
 0x18e   : > { %s818_s19 = scalar_lea.hbm %s1147_s6, 128  ;;  %s822_s24 = scalar_lea.hbm %s1200_s4, 256 }
 0x18f   : > { %p819_p11 = scmp.ne.s32.totalorder %s1147_s6, %s818_s19  ;;  %p823_p7 = scmp.lt.u32.totalorder %s1147_s6, %s1200_s4 }
 0x190   : > { %p824_p3 = scmp.lt.u32.totalorder %s822_s24, %s818_s19  ;;  %p826_p0 = scmp.lt.u32.totalorder %s818_s19, %s1147_s6 }
 0x191   : > { %p820_p2 = pnand %p819_p11, %p1228_p10 }
 0x192   : > { %p825_p4 = por %p824_p3, %p823_p7 }
 0x193   : > { %p821_p5 = pneg %p820_p2 }
 0x194   : > { %p827_p12 = por %p826_p0, %p825_p4 }
 0x196   : > { %p828_p1 = pnand %p827_p12, %p821_p5 }
 0x198   : > { %831 = shalt.err (!%p828_p1)
}
 0x199   : > { %s905_s21 = smov 64   ;;  %s906_s27 = smov 4  }
 0x19a   : > { %630 = dma.vmem_to_hbm [thread:$0]  (%p1228_p10), %s1142_s26, 128, %s1147_s6, %s459_s9, %s905_s21, %s905_s21, %s906_s27  }
 0x19b PF: > { %s1229_s14 = sld [smem:[#allocation13_spill]]  ;;  %s488_s11 = sand.u32 1, %s870_s15  }
 0x19c   : > { %p1230_p8 = scmp.ne.s32.totalorder %s1217_s30, 0  ;;  %s489_s13 = scalar_lea.sflag [#allocation4], %s488_s11 }
 0x1a1   : > { %p1231_p9 = scmp.ge.s32.totalorder %s1229_s14, 2 }
 0x1a3   : > { %p643_p6 = pnand %p1231_p9, %p1230_p8 }
 0x1a5   : > { %865 = dma.done.wait (!%p643_p6), %s489_s13, 128  }
 0x1a6   : > { %867 = vsyncadd (!%p643_p6), %s489_s13, 4294967168  ;;  %s23_s20 = sadd.s32 1, %s1229_s14   ;;  %s1232_s1 = sld [smem:[#allocation15_spill]] }
 0x1a7   : > { %p20_p13 = scmp.ge.s32.totalorder %s23_s20, 4   ;;  %s1233_s18 = sld [smem:[#allocation12_spill]] }
 0x1a8   : > { %s1234_s19 = sld [smem:[#allocation14_spill]]  ;;  %s1235_s15 = smov %s874_s16 }
 0x1a9   : > { %s1236_s16 = smov %s878_s17  ;;  %22 = sbr.rel (!%p20_p13) target bundleno = 10 (0xa), region = 106 }
 0x1ac   : > { %s1237_s17 = smov %s1232_s1 }
 0x1b0   :  { %494 = vsyncpa [#allocation3], 1 }
 0x1b1   :  { %496 = vsyncpa [#allocation3 + $0x1], 1 }
 0x1b2   :  { %497 = vsyncpa [#allocation6], 1 }
 0x1b3   :  { %499 = vsyncpa [#allocation6 + $0x1], 1 }
 0x1b4   :  { %500 = vsyncpa [#allocation4], 1 }
 0x1b5   :  { %502 = vsyncpa [#allocation4 + $0x1], 1 }

</bundles_post_ra>
